<compile_context>
chip_gen: v7x
topology: tpu7x:2x2x1
jax: 0.10.0
libtpu: 0.0.40
codegen_flags: <defaults>
</compile_context>

<pallas_src>
import functools

import numpy as np
import jax
import jax.numpy as jnp
from jax import lax
from jax.experimental import pallas as pl
from jax.experimental.pallas import tpu as pltpu


# TODO(synk): `prev_layer` (self.body) is an external module passed to the
# constructor; it is modeled as an identity returning (feat, feat).
def _body_identity(feat):
    return feat, feat


def _build_tap_masks(H, W):
    """(9, H*W) 0/1 validity masks for the 9 taps of a 3x3 zero-padded conv on
    the row-major-flattened spatial axis (tap index k = kh*3 + kw)."""
    m = np.zeros((9, H * W), np.float32)
    for kh in range(3):
        for kw in range(3):
            oh, ow = kh - 1, kw - 1
            v = np.zeros((H, W), np.float32)
            v[max(0, -oh):min(H, H - oh), max(0, -ow):min(W, W - ow)] = 1.0
            m[kh * 3 + kw] = v.reshape(-1)
    return m


def _num_tensorcores():
    """Best-effort TensorCores-per-chip (v7x=2, v5e/v6e=1). Failsafe -> 1."""
    try:
        info = pltpu.get_tpu_info()
        for attr in ("num_cores", "tensorcore_count", "num_tensorcores",
                     "cores_per_chip", "num_tensor_cores"):
            v = getattr(info, attr, None)
            if isinstance(v, int) and v > 0:
                return v
    except Exception:
        pass
    try:
        v = getattr(jax.devices()[0], "num_cores", None)
        if isinstance(v, int) and v > 0:
            return v
    except Exception:
        pass
    return 1


def _pick_nb(n, c, hw, itemsize, *, target_bytes=3 << 20, num_tc=1):
    """Batch elements per grid step.  Big blocks (~3 MiB) amortize the
    ~0.35us/step grid overhead; double-buffered in+out (4x block) plus the
    in-kernel temporaries stay well under the 32 MiB scoped-VMEM limit we
    request on every generation (incl. v7x's 64 MiB part).  Only multi-TC
    parts (v7x) force >= num_tc grid steps so both cores get work."""
    per_elem = max(1, c * hw * itemsize)
    nb = max(1, min(n, target_bytes // per_elem))
    if num_tc > 1 and n >= num_tc:
        nb = min(nb, -(-n // num_tc))   # keep at least num_tc grid steps
    return max(1, nb)


def _attn_kernel(res_ref, w1t_ref, w2t_ref, wm0_ref, wm1_ref, out_ref, *, W):
    """Fused ChannelAttention + SpatialAttention, vectorized over the nb batch
    elements of this block.

    res_ref : (nb, C, HW) VMEM f32   lane-dense: HW on the lane axis
    w1t_ref : (C, Cr)     VMEM       fc1 weight (pre-transposed in wrapper)
    w2t_ref : (Cr, C)     VMEM       fc2 weight (pre-transposed in wrapper)
    wm0_ref : (9, HW)     VMEM       3x3 tap weights (avg channel) * pad masks
    wm1_ref : (9, HW)     VMEM       3x3 tap weights (max channel) * pad masks
    out_ref : (nb, C, HW) VMEM
    """
    nb, C, HW = res_ref.shape
    f = res_ref[...]                                       # (nb, C, HW)

    # ---------- ChannelAttention: one batched MLP for the whole block ----------
    avg_ch = jnp.mean(f, axis=2)                           # (nb, C)
    max_ch = jnp.max(f, axis=2)                            # (nb, C)
    # rows interleaved: 2n = avg_n, 2n+1 = max_n
    pooled = jnp.stack([avg_ch, max_ch], axis=1).reshape(2 * nb, C)
    hid = jnp.maximum(
        jnp.dot(pooled, w1t_ref[...], preferred_element_type=jnp.float32), 0.0)
    g = jnp.dot(hid, w2t_ref[...], preferred_element_type=jnp.float32)  # (2nb, C)
    g = jnp.sum(g.reshape(nb, 2, C), axis=1)               # avg-path + max-path
    ch_gate = jax.nn.sigmoid(g)                            # (nb, C)

    # ---------- SpatialAttention: 8 rolls per *block*, not per element ----------
    avg_sp = jnp.mean(f, axis=1)                           # (nb, HW)
    max_sp = jnp.max(f, axis=1)                            # (nb, HW)
    # rows interleaved: 2n = avg_n, 2n+1 = max_n
    stacked = jnp.stack([avg_sp, max_sp], axis=1).reshape(2 * nb, HW)

    wm0 = wm0_ref[...]                                     # (9, HW)
    wm1 = wm1_ref[...]                                     # (9, HW)
    is_avg_row = lax.broadcasted_iota(jnp.int32, (2 * nb, 1), 0) % 2 == 0

    conv = jnp.zeros((2 * nb, HW), jnp.float32)
    for k in range(9):                                     # static 9-tap unroll
        kh, kw = k // 3, k % 3
        shift = (-((kh - 1) * W + (kw - 1))) % HW
        rolled = stacked if shift == 0 else pltpu.roll(stacked, shift=shift, axis=1)
        wk = jnp.where(is_avg_row, wm0[k:k + 1, :], wm1[k:k + 1, :])  # (2nb, HW)
        conv = conv + rolled * wk
    conv = jnp.sum(conv.reshape(nb, 2, HW), axis=1)        # (nb, HW)
    sp_gate = jax.nn.sigmoid(conv)

    # ---------- fused gating: f*ch + f*sp == f*(ch + sp) ----------
    gate = ch_gate[:, :, None] + sp_gate[:, None, :]       # (nb, C, HW)
    out_ref[...] = (f * gate).astype(out_ref.dtype)


@jax.jit
def attention_wrapper_forward(feat_nchw, fc1_w, fc2_w, sp_w):
    """feat_nchw: (N, C, H, W) f32.
    fc1_w: (Cr, C, 1, 1), fc2_w: (C, Cr, 1, 1), sp_w: (1, 2, 3, 3) (PyTorch layouts).
    Returns (x, res_out), both NCHW, matching AttentionWrapper.forward."""
    x, res_nchw = _body_identity(feat_nchw)
    N, C, H, W = res_nchw.shape
    HW = H * W

    # Free (metadata-only) flatten; stays NCHW, no transposes of the big tensor.
    res = res_nchw.reshape(N, C, HW)

    w1t = fc1_w[:, :, 0, 0].T                              # (C, Cr)
    w2t = fc2_w[:, :, 0, 0].T                              # (Cr, C)
    Cr = w1t.shape[1]

    masks = jnp.asarray(_build_tap_masks(H, W))            # (9, HW)
    wm0 = sp_w[0, 0].reshape(9, 1) * masks                 # avg-channel tap weights
    wm1 = sp_w[0, 1].reshape(9, 1) * masks                 # max-channel tap weights

    nb = _pick_nb(N, C, HW, res.dtype.itemsize, num_tc=_num_tensorcores())
    n_blocks = pl.cdiv(N, nb)
    n_pad = n_blocks * nb
    if n_pad != N:                                         # robust to awkward N
        res = jnp.pad(res, ((0, n_pad - N), (0, 0), (0, 0)))

    out = pl.pallas_call(
        functools.partial(_attn_kernel, W=W),
        out_shape=jax.ShapeDtypeStruct((n_pad, C, HW), res.dtype),
        grid=(n_blocks,),
        in_specs=[
            pl.BlockSpec((nb, C, HW), lambda n: (n, 0, 0)),
            pl.BlockSpec((C, Cr), lambda n: (0, 0)),
            pl.BlockSpec((Cr, C), lambda n: (0, 0)),
            pl.BlockSpec((9, HW), lambda n: (0, 0)),
            pl.BlockSpec((9, HW), lambda n: (0, 0)),
        ],
        out_specs=pl.BlockSpec((nb, C, HW), lambda n: (n, 0, 0)),
        compiler_params=pltpu.CompilerParams(
            dimension_semantics=("parallel",),
            vmem_limit_bytes=32 << 20),
    )(res, w1t, w2t, wm0, wm1)

    if n_pad != N:
        out = out[:N]
    return x, out.reshape(N, C, H, W)


def _reference(feat, fc1_w, fc2_w, sp_w):
    """Pure-JAX reference of AttentionWrapper.forward (identity body)."""
    x, res = _body_identity(feat)

    # ChannelAttention
    avg = jnp.mean(res, axis=(2, 3), keepdims=True)
    mx = jnp.max(res, axis=(2, 3), keepdims=True)

    def mlp(v):
        h = jnp.einsum('nchw,oc->nohw', v, fc1_w[:, :, 0, 0])
        h = jnp.maximum(h, 0.0)
        return jnp.einsum('nchw,oc->nohw', h, fc2_w[:, :, 0, 0])

    res_ch = jax.nn.sigmoid(mlp(avg) + mlp(mx)) * res

    # SpatialAttention (3x3 conv, zero padding)
    avg_c = jnp.mean(res, axis=1, keepdims=True)
    max_c = jnp.max(res, axis=1, keepdims=True)
    x2 = jnp.concatenate([avg_c, max_c], axis=1)
    conv = jax.lax.conv_general_dilated(
        x2, sp_w, window_strides=(1, 1), padding=((1, 1), (1, 1)),
        dimension_numbers=('NCHW', 'OIHW', 'NCHW'))
    res_sp = jax.nn.sigmoid(conv) * res

    return x, res_ch + res_sp


if __name__ == "__main__":
    # Small shapes consistent with the module.
    N, C, H, W = 2, 8, 16, 16
    reduction = 4
    Cr = max(1, C // reduction)

    key = jax.random.PRNGKey(0)
    k_feat, k1, k2, k3 = jax.random.split(key, 4)

    feat = jax.random.normal(k_feat, (N, C, H, W), dtype=jnp.float32)
    fc1_w = jax.random.normal(k1, (Cr, C, 1, 1), dtype=jnp.float32) * 0.2
    fc2_w = jax.random.normal(k2, (C, Cr, 1, 1), dtype=jnp.float32) * 0.2
    sp_w = jax.random.normal(k3, (1, 2, 3, 3), dtype=jnp.float32) * 0.2

    x, res_out = attention_wrapper_forward(feat, fc1_w, fc2_w, sp_w)
    jax.block_until_ready(res_out)

    x_ref, res_ref = _reference(feat, fc1_w, fc2_w, sp_w)
    assert jnp.allclose(x, x_ref, atol=1e-5, rtol=1e-5)
    assert jnp.allclose(res_out, res_ref, atol=1e-4, rtol=1e-4)

    print("KERNEL_OK")
</pallas_src>

<mosaic_0001>
module attributes {stable_mosaic.version = 11 : i64} {
  func.func @_attn_kernel(%arg0: i32, %arg1: memref<2x8x256xf32, #tpu.memory_space<vmem>>, %arg2: memref<8x2xf32, #tpu.memory_space<vmem>>, %arg3: memref<2x8xf32, #tpu.memory_space<vmem>>, %arg4: memref<9x256xf32, #tpu.memory_space<vmem>>, %arg5: memref<9x256xf32, #tpu.memory_space<vmem>>, %arg6: memref<2x8x256xf32, #tpu.memory_space<vmem>>) attributes {dimension_semantics = [#tpu.dimension_semantics<parallel>], iteration_bounds = array<i64: 1>, scalar_prefetch = 0 : i64, scratch_operands = 0 : i64, tpu.core_type = #tpu.core_type<tc>, window_params = [{transform_indices = @transform_0, window_bounds = array<i64: 2, 8, 256>}, {pipeline_mode = #tpu.pipeline_mode<synchronous>, transform_indices = @transform_1, window_bounds = array<i64: 8, 2>}, {pipeline_mode = #tpu.pipeline_mode<synchronous>, transform_indices = @transform_2, window_bounds = array<i64: 2, 8>}, {pipeline_mode = #tpu.pipeline_mode<synchronous>, transform_indices = @transform_3, window_bounds = array<i64: 9, 256>}, {pipeline_mode = #tpu.pipeline_mode<synchronous>, transform_indices = @transform_4, window_bounds = array<i64: 9, 256>}, {transform_indices = @transform_5, window_bounds = array<i64: 2, 8, 256>}]} {
    %c0 = arith.constant 0 : index
    %c0_0 = arith.constant 0 : index
    %c0_1 = arith.constant 0 : index
    %0 = vector.load %arg1[%c0, %c0_0, %c0_1] : memref<2x8x256xf32, #tpu.memory_space<vmem>>, vector<2x8x256xf32>
    %cst = arith.constant dense<0.000000e+00> : vector<2x8xf32>
    %1 = vector.multi_reduction <add>, %0, %cst [2] : vector<2x8x256xf32> to vector<2x8xf32>
    %cst_2 = arith.constant 2.560000e+02 : f32
    %2 = vector.broadcast %cst_2 : f32 to vector<2x8xf32>
    %3 = arith.divf %1, %2 : vector<2x8xf32>
    %cst_3 = arith.constant dense<0xFF800000> : vector<2x8xf32>
    %4 = vector.multi_reduction <maximumf>, %0, %cst_3 [2] : vector<2x8x256xf32> to vector<2x8xf32>
    %5 = vector.shape_cast %3 : vector<2x8xf32> to vector<2x1x8xf32>
    %6 = vector.shape_cast %4 : vector<2x8xf32> to vector<2x1x8xf32>
    %7 = tpu.concatenate %5, %6 in 1 : vector<2x1x8xf32>, vector<2x1x8xf32> -> vector<2x2x8xf32>
    %8 = vector.shape_cast %7 : vector<2x2x8xf32> to vector<4x8xf32>
    %c0_4 = arith.constant 0 : index
    %c0_5 = arith.constant 0 : index
    %9 = vector.load %arg2[%c0_4, %c0_5] : memref<8x2xf32, #tpu.memory_space<vmem>>, vector<8x2xf32>
    %cst_6 = arith.constant dense<0.000000e+00> : vector<4x2xf32>
    %10 = tpu.matmul %8, %9, %cst_6 {dimension_numbers = #tpu.dot_dimension_numbers<[1], [0], [0], [1], [0, 0, 1, 1], [], []>} : vector<4x8xf32>, vector<8x2xf32>, vector<4x2xf32> -> vector<4x2xf32>
    %cst_7 = arith.constant 0.000000e+00 : f32
    %11 = vector.broadcast %cst_7 : f32 to vector<4x2xf32>
    %12 = arith.maximumf %10, %11 : vector<4x2xf32>
    %c0_8 = arith.constant 0 : index
    %c0_9 = arith.constant 0 : index
    %13 = vector.load %arg3[%c0_8, %c0_9] : memref<2x8xf32, #tpu.memory_space<vmem>>, vector<2x8xf32>
    %cst_10 = arith.constant dense<0.000000e+00> : vector<4x8xf32>
    %14 = tpu.matmul %12, %13, %cst_10 {dimension_numbers = #tpu.dot_dimension_numbers<[1], [0], [0], [1], [0, 0, 1, 1], [], []>} : vector<4x2xf32>, vector<2x8xf32>, vector<4x8xf32> -> vector<4x8xf32>
    %15 = vector.shape_cast %14 : vector<4x8xf32> to vector<2x2x8xf32>
    %cst_11 = arith.constant dense<0.000000e+00> : vector<2x8xf32>
    %16 = vector.multi_reduction <add>, %15, %cst_11 [1] : vector<2x2x8xf32> to vector<2x8xf32>
    %17 = arith.negf %16 : vector<2x8xf32>
    %18 = math.exp %17 : vector<2x8xf32>
    %cst_12 = arith.constant 1.000000e+00 : f32
    %19 = vector.broadcast %cst_12 : f32 to vector<2x8xf32>
    %20 = arith.addf %19, %18 : vector<2x8xf32>
    %21 = arith.divf %19, %20 : vector<2x8xf32>
    %cst_13 = arith.constant dense<0.000000e+00> : vector<2x256xf32>
    %22 = vector.multi_reduction <add>, %0, %cst_13 [1] : vector<2x8x256xf32> to vector<2x256xf32>
    %cst_14 = arith.constant 8.000000e+00 : f32
    %23 = vector.broadcast %cst_14 : f32 to vector<2x256xf32>
    %24 = arith.divf %22, %23 : vector<2x256xf32>
    %cst_15 = arith.constant dense<0xFF800000> : vector<2x256xf32>
    %25 = vector.multi_reduction <maximumf>, %0, %cst_15 [1] : vector<2x8x256xf32> to vector<2x256xf32>
    %26 = vector.shape_cast %24 : vector<2x256xf32> to vector<2x1x256xf32>
    %27 = vector.shape_cast %25 : vector<2x256xf32> to vector<2x1x256xf32>
    %28 = tpu.concatenate %26, %27 in 1 : vector<2x1x256xf32>, vector<2x1x256xf32> -> vector<2x2x256xf32>
    %29 = vector.shape_cast %28 : vector<2x2x256xf32> to vector<4x256xf32>
    %c0_16 = arith.constant 0 : index
    %c0_17 = arith.constant 0 : index
    %30 = vector.load %arg4[%c0_16, %c0_17] : memref<9x256xf32, #tpu.memory_space<vmem>>, vector<9x256xf32>
    %c0_18 = arith.constant 0 : index
    %c0_19 = arith.constant 0 : index
    %31 = vector.load %arg5[%c0_18, %c0_19] : memref<9x256xf32, #tpu.memory_space<vmem>>, vector<9x256xf32>
    %32 = tpu.iota {dimensions = array<i32: 0>} : vector<4x1xi32>
    %c2_i32 = arith.constant 2 : i32
    %c0_i32 = arith.constant 0 : i32
    %33 = arith.cmpi eq, %c2_i32, %c0_i32 : i32
    %c1_i32 = arith.constant 1 : i32
    %34 = arith.select %33, %c1_i32, %c2_i32 : i32
    %35 = vector.broadcast %34 : i32 to vector<4x1xi32>
    %36 = arith.remsi %32, %35 : vector<4x1xi32>
    %c0_i32_20 = arith.constant 0 : i32
    %37 = vector.broadcast %c0_i32_20 : i32 to vector<4x1xi32>
    %38 = arith.cmpi ne, %36, %37 : vector<4x1xi32>
    %c0_i32_21 = arith.constant 0 : i32
    %39 = vector.broadcast %c0_i32_21 : i32 to vector<4x1xi32>
    %40 = arith.cmpi slt, %36, %39 : vector<4x1xi32>
    %c0_i32_22 = arith.constant 0 : i32
    %41 = arith.cmpi slt, %34, %c0_i32_22 : i32
    %42 = vector.broadcast %41 : i1 to vector<4x1xi1>
    %43 = vector.broadcast %42 : vector<4x1xi1> to vector<4x1xi1>
    %44 = arith.xori %40, %43 : vector<4x1xi1>
    %45 = arith.andi %44, %38 : vector<4x1xi1>
    %46 = vector.broadcast %34 : i32 to vector<4x1xi32>
    %47 = arith.addi %36, %46 : vector<4x1xi32>
    %48 = arith.select %45, %47, %36 : vector<4x1xi1>, vector<4x1xi32>
    %c0_i32_23 = arith.constant 0 : i32
    %49 = vector.broadcast %c0_i32_23 : i32 to vector<4x1xi32>
    %50 = arith.cmpi eq, %48, %49 : vector<4x1xi32>
    %cst_24 = arith.constant 0.000000e+00 : f32
    %51 = vector.broadcast %cst_24 : f32 to vector<4x256xf32>
    %c17_i32 = arith.constant 17 : i32
    %52 = tpu.dynamic_rotate %29 by %c17_i32 dim 1 : vector<4x256xf32>, i32 -> vector<4x256xf32>
    %53 = vector.extract_strided_slice %30 {offsets = [0, 0], sizes = [1, 256], strides = [1, 1]} : vector<9x256xf32> to vector<1x256xf32>
    %54 = vector.extract_strided_slice %31 {offsets = [0, 0], sizes = [1, 256], strides = [1, 1]} : vector<9x256xf32> to vector<1x256xf32>
    %55 = vector.shape_cast %50 : vector<4x1xi1> to vector<4x1xi1>
    %56 = vector.broadcast %55 : vector<4x1xi1> to vector<4x256xi1>
    %57 = vector.shape_cast %53 : vector<1x256xf32> to vector<1x256xf32>
    %58 = vector.broadcast %57 : vector<1x256xf32> to vector<4x256xf32>
    %59 = vector.shape_cast %54 : vector<1x256xf32> to vector<1x256xf32>
    %60 = vector.broadcast %59 : vector<1x256xf32> to vector<4x256xf32>
    %61 = arith.select %56, %58, %60 : vector<4x256xi1>, vector<4x256xf32>
    %62 = arith.mulf %52, %61 : vector<4x256xf32>
    %63 = arith.addf %51, %62 : vector<4x256xf32>
    %c16_i32 = arith.constant 16 : i32
    %64 = tpu.dynamic_rotate %29 by %c16_i32 dim 1 : vector<4x256xf32>, i32 -> vector<4x256xf32>
    %65 = vector.extract_strided_slice %30 {offsets = [1, 0], sizes = [1, 256], strides = [1, 1]} : vector<9x256xf32> to vector<1x256xf32>
    %66 = vector.extract_strided_slice %31 {offsets = [1, 0], sizes = [1, 256], strides = [1, 1]} : vector<9x256xf32> to vector<1x256xf32>
    %67 = vector.shape_cast %50 : vector<4x1xi1> to vector<4x1xi1>
    %68 = vector.broadcast %67 : vector<4x1xi1> to vector<4x256xi1>
    %69 = vector.shape_cast %65 : vector<1x256xf32> to vector<1x256xf32>
    %70 = vector.broadcast %69 : vector<1x256xf32> to vector<4x256xf32>
    %71 = vector.shape_cast %66 : vector<1x256xf32> to vector<1x256xf32>
    %72 = vector.broadcast %71 : vector<1x256xf32> to vector<4x256xf32>
    %73 = arith.select %68, %70, %72 : vector<4x256xi1>, vector<4x256xf32>
    %74 = arith.mulf %64, %73 : vector<4x256xf32>
    %75 = arith.addf %63, %74 : vector<4x256xf32>
    %c15_i32 = arith.constant 15 : i32
    %76 = tpu.dynamic_rotate %29 by %c15_i32 dim 1 : vector<4x256xf32>, i32 -> vector<4x256xf32>
    %77 = vector.extract_strided_slice %30 {offsets = [2, 0], sizes = [1, 256], strides = [1, 1]} : vector<9x256xf32> to vector<1x256xf32>
    %78 = vector.extract_strided_slice %31 {offsets = [2, 0], sizes = [1, 256], strides = [1, 1]} : vector<9x256xf32> to vector<1x256xf32>
    %79 = vector.shape_cast %50 : vector<4x1xi1> to vector<4x1xi1>
    %80 = vector.broadcast %79 : vector<4x1xi1> to vector<4x256xi1>
    %81 = vector.shape_cast %77 : vector<1x256xf32> to vector<1x256xf32>
    %82 = vector.broadcast %81 : vector<1x256xf32> to vector<4x256xf32>
    %83 = vector.shape_cast %78 : vector<1x256xf32> to vector<1x256xf32>
    %84 = vector.broadcast %83 : vector<1x256xf32> to vector<4x256xf32>
    %85 = arith.select %80, %82, %84 : vector<4x256xi1>, vector<4x256xf32>
    %86 = arith.mulf %76, %85 : vector<4x256xf32>
    %87 = arith.addf %75, %86 : vector<4x256xf32>
    %c1_i32_25 = arith.constant 1 : i32
    %88 = tpu.dynamic_rotate %29 by %c1_i32_25 dim 1 : vector<4x256xf32>, i32 -> vector<4x256xf32>
    %89 = vector.extract_strided_slice %30 {offsets = [3, 0], sizes = [1, 256], strides = [1, 1]} : vector<9x256xf32> to vector<1x256xf32>
    %90 = vector.extract_strided_slice %31 {offsets = [3, 0], sizes = [1, 256], strides = [1, 1]} : vector<9x256xf32> to vector<1x256xf32>
    %91 = vector.shape_cast %50 : vector<4x1xi1> to vector<4x1xi1>
    %92 = vector.broadcast %91 : vector<4x1xi1> to vector<4x256xi1>
    %93 = vector.shape_cast %89 : vector<1x256xf32> to vector<1x256xf32>
    %94 = vector.broadcast %93 : vector<1x256xf32> to vector<4x256xf32>
    %95 = vector.shape_cast %90 : vector<1x256xf32> to vector<1x256xf32>
    %96 = vector.broadcast %95 : vector<1x256xf32> to vector<4x256xf32>
    %97 = arith.select %92, %94, %96 : vector<4x256xi1>, vector<4x256xf32>
    %98 = arith.mulf %88, %97 : vector<4x256xf32>
    %99 = arith.addf %87, %98 : vector<4x256xf32>
    %100 = vector.extract_strided_slice %30 {offsets = [4, 0], sizes = [1, 256], strides = [1, 1]} : vector<9x256xf32> to vector<1x256xf32>
    %101 = vector.extract_strided_slice %31 {offsets = [4, 0], sizes = [1, 256], strides = [1, 1]} : vector<9x256xf32> to vector<1x256xf32>
    %102 = vector.shape_cast %50 : vector<4x1xi1> to vector<4x1xi1>
    %103 = vector.broadcast %102 : vector<4x1xi1> to vector<4x256xi1>
    %104 = vector.shape_cast %100 : vector<1x256xf32> to vector<1x256xf32>
    %105 = vector.broadcast %104 : vector<1x256xf32> to vector<4x256xf32>
    %106 = vector.shape_cast %101 : vector<1x256xf32> to vector<1x256xf32>
    %107 = vector.broadcast %106 : vector<1x256xf32> to vector<4x256xf32>
    %108 = arith.select %103, %105, %107 : vector<4x256xi1>, vector<4x256xf32>
    %109 = arith.mulf %29, %108 : vector<4x256xf32>
    %110 = arith.addf %99, %109 : vector<4x256xf32>
    %c255_i32 = arith.constant 255 : i32
    %111 = tpu.dynamic_rotate %29 by %c255_i32 dim 1 : vector<4x256xf32>, i32 -> vector<4x256xf32>
    %112 = vector.extract_strided_slice %30 {offsets = [5, 0], sizes = [1, 256], strides = [1, 1]} : vector<9x256xf32> to vector<1x256xf32>
    %113 = vector.extract_strided_slice %31 {offsets = [5, 0], sizes = [1, 256], strides = [1, 1]} : vector<9x256xf32> to vector<1x256xf32>
    %114 = vector.shape_cast %50 : vector<4x1xi1> to vector<4x1xi1>
    %115 = vector.broadcast %114 : vector<4x1xi1> to vector<4x256xi1>
    %116 = vector.shape_cast %112 : vector<1x256xf32> to vector<1x256xf32>
    %117 = vector.broadcast %116 : vector<1x256xf32> to vector<4x256xf32>
    %118 = vector.shape_cast %113 : vector<1x256xf32> to vector<1x256xf32>
    %119 = vector.broadcast %118 : vector<1x256xf32> to vector<4x256xf32>
    %120 = arith.select %115, %117, %119 : vector<4x256xi1>, vector<4x256xf32>
    %121 = arith.mulf %111, %120 : vector<4x256xf32>
    %122 = arith.addf %110, %121 : vector<4x256xf32>
    %c241_i32 = arith.constant 241 : i32
    %123 = tpu.dynamic_rotate %29 by %c241_i32 dim 1 : vector<4x256xf32>, i32 -> vector<4x256xf32>
    %124 = vector.extract_strided_slice %30 {offsets = [6, 0], sizes = [1, 256], strides = [1, 1]} : vector<9x256xf32> to vector<1x256xf32>
    %125 = vector.extract_strided_slice %31 {offsets = [6, 0], sizes = [1, 256], strides = [1, 1]} : vector<9x256xf32> to vector<1x256xf32>
    %126 = vector.shape_cast %50 : vector<4x1xi1> to vector<4x1xi1>
    %127 = vector.broadcast %126 : vector<4x1xi1> to vector<4x256xi1>
    %128 = vector.shape_cast %124 : vector<1x256xf32> to vector<1x256xf32>
    %129 = vector.broadcast %128 : vector<1x256xf32> to vector<4x256xf32>
    %130 = vector.shape_cast %125 : vector<1x256xf32> to vector<1x256xf32>
    %131 = vector.broadcast %130 : vector<1x256xf32> to vector<4x256xf32>
    %132 = arith.select %127, %129, %131 : vector<4x256xi1>, vector<4x256xf32>
    %133 = arith.mulf %123, %132 : vector<4x256xf32>
    %134 = arith.addf %122, %133 : vector<4x256xf32>
    %c240_i32 = arith.constant 240 : i32
    %135 = tpu.dynamic_rotate %29 by %c240_i32 dim 1 : vector<4x256xf32>, i32 -> vector<4x256xf32>
    %136 = vector.extract_strided_slice %30 {offsets = [7, 0], sizes = [1, 256], strides = [1, 1]} : vector<9x256xf32> to vector<1x256xf32>
    %137 = vector.extract_strided_slice %31 {offsets = [7, 0], sizes = [1, 256], strides = [1, 1]} : vector<9x256xf32> to vector<1x256xf32>
    %138 = vector.shape_cast %50 : vector<4x1xi1> to vector<4x1xi1>
    %139 = vector.broadcast %138 : vector<4x1xi1> to vector<4x256xi1>
    %140 = vector.shape_cast %136 : vector<1x256xf32> to vector<1x256xf32>
    %141 = vector.broadcast %140 : vector<1x256xf32> to vector<4x256xf32>
    %142 = vector.shape_cast %137 : vector<1x256xf32> to vector<1x256xf32>
    %143 = vector.broadcast %142 : vector<1x256xf32> to vector<4x256xf32>
    %144 = arith.select %139, %141, %143 : vector<4x256xi1>, vector<4x256xf32>
    %145 = arith.mulf %135, %144 : vector<4x256xf32>
    %146 = arith.addf %134, %145 : vector<4x256xf32>
    %c239_i32 = arith.constant 239 : i32
    %147 = tpu.dynamic_rotate %29 by %c239_i32 dim 1 : vector<4x256xf32>, i32 -> vector<4x256xf32>
    %148 = vector.extract_strided_slice %30 {offsets = [8, 0], sizes = [1, 256], strides = [1, 1]} : vector<9x256xf32> to vector<1x256xf32>
    %149 = vector.extract_strided_slice %31 {offsets = [8, 0], sizes = [1, 256], strides = [1, 1]} : vector<9x256xf32> to vector<1x256xf32>
    %150 = vector.shape_cast %50 : vector<4x1xi1> to vector<4x1xi1>
    %151 = vector.broadcast %150 : vector<4x1xi1> to vector<4x256xi1>
    %152 = vector.shape_cast %148 : vector<1x256xf32> to vector<1x256xf32>
    %153 = vector.broadcast %152 : vector<1x256xf32> to vector<4x256xf32>
    %154 = vector.shape_cast %149 : vector<1x256xf32> to vector<1x256xf32>
    %155 = vector.broadcast %154 : vector<1x256xf32> to vector<4x256xf32>
    %156 = arith.select %151, %153, %155 : vector<4x256xi1>, vector<4x256xf32>
    %157 = arith.mulf %147, %156 : vector<4x256xf32>
    %158 = arith.addf %146, %157 : vector<4x256xf32>
    %159 = vector.shape_cast %158 : vector<4x256xf32> to vector<2x2x256xf32>
    %cst_26 = arith.constant dense<0.000000e+00> : vector<2x256xf32>
    %160 = vector.multi_reduction <add>, %159, %cst_26 [1] : vector<2x2x256xf32> to vector<2x256xf32>
    %161 = arith.negf %160 : vector<2x256xf32>
    %162 = math.exp %161 : vector<2x256xf32>
    %cst_27 = arith.constant 1.000000e+00 : f32
    %163 = vector.broadcast %cst_27 : f32 to vector<2x256xf32>
    %164 = arith.addf %163, %162 : vector<2x256xf32>
    %165 = arith.divf %163, %164 : vector<2x256xf32>
    %166 = vector.shape_cast %21 : vector<2x8xf32> to vector<2x8x1xf32>
    %167 = vector.shape_cast %165 : vector<2x256xf32> to vector<2x1x256xf32>
    %168 = vector.broadcast %166 : vector<2x8x1xf32> to vector<2x8x256xf32>
    %169 = vector.broadcast %167 : vector<2x1x256xf32> to vector<2x8x256xf32>
    %170 = arith.addf %168, %169 : vector<2x8x256xf32>
    %171 = arith.mulf %0, %170 : vector<2x8x256xf32>
    %c0_28 = arith.constant 0 : index
    %c0_29 = arith.constant 0 : index
    %c0_30 = arith.constant 0 : index
    %172 = vector.load %arg6[%c0_28, %c0_29, %c0_30] : memref<2x8x256xf32, #tpu.memory_space<vmem>>, vector<2x8x256xf32>
    tpu.vector_store %arg6[%c0_28, %c0_29, %c0_30], %171 {strides = array<i32>} : memref<2x8x256xf32, #tpu.memory_space<vmem>>, vector<2x8x256xf32>,
    return
  }
  func.func @transform_0(%arg0: i32) -> (i32, i32, i32) {
    %c0_i32 = arith.constant 0 : i32
    %c0_i32_0 = arith.constant 0 : i32
    %c0_i32_1 = arith.constant 0 : i32
    return %arg0, %c0_i32, %c0_i32_0 : i32, i32, i32
  }
  func.func @transform_1(%arg0: i32) -> (i32, i32) {
    %c0_i32 = arith.constant 0 : i32
    %c0_i32_0 = arith.constant 0 : i32
    %c0_i32_1 = arith.constant 0 : i32
    return %c0_i32, %c0_i32_0 : i32, i32
  }
  func.func @transform_2(%arg0: i32) -> (i32, i32) {
    %c0_i32 = arith.constant 0 : i32
    %c0_i32_0 = arith.constant 0 : i32
    %c0_i32_1 = arith.constant 0 : i32
    return %c0_i32, %c0_i32_0 : i32, i32
  }
  func.func @transform_3(%arg0: i32) -> (i32, i32) {
    %c0_i32 = arith.constant 0 : i32
    %c0_i32_0 = arith.constant 0 : i32
    %c0_i32_1 = arith.constant 0 : i32
    return %c0_i32, %c0_i32_0 : i32, i32
  }
  func.func @transform_4(%arg0: i32) -> (i32, i32) {
    %c0_i32 = arith.constant 0 : i32
    %c0_i32_0 = arith.constant 0 : i32
    %c0_i32_1 = arith.constant 0 : i32
    return %c0_i32, %c0_i32_0 : i32, i32
  }
  func.func @transform_5(%arg0: i32) -> (i32, i32, i32) {
    %c0_i32 = arith.constant 0 : i32
    %c0_i32_0 = arith.constant 0 : i32
    %c0_i32_1 = arith.constant 0 : i32
    return %arg0, %c0_i32, %c0_i32_0 : i32, i32, i32
  }
}

</mosaic_0001>

<bundles_post_ra>
// kernel: mul.13
= control target key start
LH: loop header
LB: loop body
LE: loop exit
PB: predicated region body
PF: predicated region fallthrough
CT: control target
= control target key end

     0   :  { %vm7_vm0 = vcmask 23552   ;;  %s30_s8 = smov 3   ;;  %vm13_vm1 = vcmask 72752   ;;  %vm19_vm2 = vcmask 48152   ;;  %s47_s0 = inlined_call_operand.vmem [shape: f32[3,3], index: 0, kind: input, shape index: {}]   ;;  %s48_s1 = inlined_call_operand.vmem [shape: f32[9], index: 1, kind: output, shape index: {}]  }
   0x1   :  { %v4_v0 = vld [vmem:[%s47_s0] sm:$0xf]  ;;  %s29_s0 = smov 6  }
   0x2   :  { %5 = vst [vmem:[#allocation1] sm:$0xf] %v4_v0 }
   0x9   :  { %v10_v1 = vld [vmem:[#allocation1 + $0x2] sm:$0x1]   ;;  %v6_v2 = vld [vmem:[#allocation1] sm:$0x1]   ;;  %v16_v3 = vld [vmem:[#allocation1 + $0x1] sm:$0x1]  }
   0xa   :  { %11 = vrot.lane.b32.xlu0 %v10_v1, %s29_s0  ;;  %8 = vst.msk [vmem:[#allocation0] sm:$0x1] %vm7_vm0, %v6_v2  }
   0xe   :  { %17 = vrot.lane.b32.xlu0 %v16_v3, %s30_s8 }
  0x7c   :  { %v12_v4 = vpop.permute.xlu0 %11  }
  0x7d   :  { %14 = vst.msk [vmem:[#allocation0] sm:$0x1] %vm13_vm1, %v12_v4  }
  0x80   :  { %v18_v5 = vpop.permute.xlu0 %17  }
  0x81   :  { %20 = vst.msk [vmem:[#allocation0] sm:$0x1] %vm19_vm2, %v18_v5  }
  0x88   :  { %v24_v6 = vld [vmem:[#allocation0] sm:$0x1] }
  0x89   :  { %26 = vst [vmem:[%s48_s1] sm:$0x1] %v24_v6 }

// kernel: attention_wrapper_forward.1
= control target key start
LH: loop header
LB: loop body
LE: loop exit
PB: predicated region body
PF: predicated region fallthrough
CT: control target
= control target key end

     0   :  { %v832_v8 = vmov 0.0   ;;  %vm833_vm0 = vmmov 0   ;;  %v41_v10 = vlaneseq  ;;  %v834_v14 = vmov 1983009808   ;;  %s835_s28 = smov 16   ;;  %s836_s29 = smov 17   ;;  %s1098_s0 = inlined_call_operand.vmem [shape: f32[2,8,256], index: 0, kind: input, shape index: {}]   ;;  %s1099_s1 = inlined_call_operand.vmem [shape: f32[8,2], index: 1, kind: input, shape index: {}]   ;;  %s1100_s2 = inlined_call_operand.vmem [shape: f32[2,8], index: 2, kind: input, shape index: {}]   ;;  %s1101_s3 = inlined_call_operand.vmem [shape: f32[9,256], index: 3, kind: input, shape index: {}]   ;;  %s1102_s4 = inlined_call_operand.vmem [shape: f32[9,256], index: 4, kind: input, shape index: {}]   ;;  %s1103_s5 = inlined_call_operand.vmem [shape: f32[2,8,256], index: 5, kind: output, shape index: {}]  }
   0x1   :  { %v876_v0 = vld [vmem:[%s1098_s0] sm:$0xff]  ;;  %v881_v1 = vld [vmem:[%s1098_s0 + $0x8] sm:$0xff]  ;;  %v886_v2 = vld [vmem:[%s1098_s0 + $0x10] sm:$0xff]  ;;  %787 = vmatprep.subr.mxu0 %v832_v8  ;;  %789 = vmatprep.mubr.msk.f32.mxu0 %vm833_vm0, %v832_v8  ;;  %v73_v15 = vunpack.c.l.s4 %v834_v14  ;;  %vm65_vm1 = vcmask 1040384   ;;  %vm79_vm2 = vcmask 64512   ;;  %vm158_vm3 = vcmask 1041408  }
   0x2   :  { %v24_v3 = vadd.f32 %v881_v1, %v876_v0  ;;  %v33_v4 = vmax.f32 %v876_v0, %v881_v1  ;;  %v895_v5 = vld [vmem:[%s1098_s0 + $0x18] sm:$0xff]  ;;  %v68_v9 = vld [vmem:[%s1099_s1] sm:$0xff]  ;;  %792 = vmatprep.subr.mxu1 %v832_v8  ;;  %794 = vmatprep.mubr.msk.f32.mxu1 %vm833_vm0, %v832_v8  ;;  %v904_v11 = vand.u32 127, %v41_v10  ;;  %v906_v12 = vshrl.u32 %v41_v10, 7  ;;  %s837_s30 = smov 15   ;;  %s838_s6 = smov 1  }
   0x3   :  { %v27_v6 = vadd.f32 %v895_v5, %v886_v2  ;;  %v36_v7 = vmax.f32 %v886_v2, %v895_v5  ;;  %788 = vmatpush3.msra.mxu0 %v68_v9  ;;  %v74_v19 = vunpack.c.0.s8 %v73_v15  ;;  %v270_v32 = vrot.slane %v876_v0, 4  ;;  %s839_s7 = smov 127   ;;  %s840_s8 = smov 113  }
   0x4   :  { %25 = vadd.xlane.f32.xlu0 %v24_v3  ;;  %34 = vmax.xlane.f32.xlu1 %v33_v4  ;;  %v45_v16 = vsub.s32 %v904_v11, %v906_v12  ;;  %v276_v33 = vrot.slane %v881_v1, 4  ;;  %v282_v34 = vrot.slane %v886_v2, 4  ;;  %v288_v35 = vrot.slane %v895_v5, 4  ;;  %s842_s9 = smov 111  }
   0x5   :  { %v911_v27 = vsub.s32 %v74_v19, %v906_v12  ;;  %v271_v36 = vadd.f32 %v270_v32, %v876_v0  ;;  %v300_v40 = vmax.f32 %v876_v0, %v270_v32  ;;  %vm154_vm4 = vcmask 15360  }
   0x6   :  { %v277_v37 = vadd.f32 %v276_v33, %v881_v1  ;;  %v283_v38 = vadd.f32 %v282_v34, %v886_v2  ;;  %v289_v39 = vadd.f32 %v288_v35, %v895_v5  ;;  %v306_v41 = vmax.f32 %v881_v1, %v276_v33  ;;  %v153_v33 = vld [vmem:[%s1100_s2] sm:$0x3]  ;;  %s841_s2 = smov 112  }
   0x7   :  { %v312_v42 = vmax.f32 %v886_v2, %v282_v34  ;;  %v318_v43 = vmax.f32 %v895_v5, %v288_v35  ;;  %v272_v44 = vrot.slane %v271_v36, 2  ;;  %v301_v48 = vrot.slane %v300_v40, 2  ;;  %793 = vmatpush3.msk.msra.mxu1 %vm158_vm3, %v153_v33 }
   0x8   :  { %28 = vadd.xlane.f32.xlu0 %v27_v6  ;;  %37 = vmax.xlane.f32.xlu1 %v36_v7  ;;  %v278_v45 = vrot.slane %v277_v37, 2  ;;  %v284_v46 = vrot.slane %v283_v38, 2  ;;  %v290_v47 = vrot.slane %v289_v39, 2  ;;  %v307_v49 = vrot.slane %v306_v41, 2 }
   0x9   :  { %v313_v50 = vrot.slane %v312_v42, 2  ;;  %v319_v51 = vrot.slane %v318_v43, 2  ;;  %v273_v52 = vadd.f32 %v272_v44, %v271_v36  ;;  %v302_v56 = vmax.f32 %v300_v40, %v301_v48 }
   0xa   :  { %v279_v53 = vadd.f32 %v278_v45, %v277_v37  ;;  %v285_v54 = vadd.f32 %v284_v46, %v283_v38  ;;  %v291_v55 = vadd.f32 %v290_v47, %v289_v39  ;;  %v308_v57 = vmax.f32 %v306_v41, %v307_v49 }
   0xb   :  { %v314_v58 = vmax.f32 %v312_v42, %v313_v50  ;;  %v320_v59 = vmax.f32 %v318_v43, %v319_v51  ;;  %v274_v60 = vrot.slane %v273_v52, 1  ;;  %v303_v3 = vrot.slane %v302_v56, 1 }
   0xc   :  { %v280_v61 = vrot.slane %v279_v53, 1  ;;  %v286_v62 = vrot.slane %v285_v54, 1  ;;  %v292_v63 = vrot.slane %v291_v55, 1  ;;  %v309_v4 = vrot.slane %v308_v57, 1 }
   0xd   :  { %v315_v6 = vrot.slane %v314_v58, 1  ;;  %v321_v7 = vrot.slane %v320_v59, 1  ;;  %v275_v8 = vadd.f32 %v274_v60, %v273_v52  ;;  %v304_v14 = vmax.f32 %v302_v56, %v303_v3 }
   0xe   :  { %v281_v9 = vadd.f32 %v280_v61, %v279_v53  ;;  %v287_v10 = vadd.f32 %v286_v62, %v285_v54  ;;  %v310_v15 = vmax.f32 %v308_v57, %v309_v4  ;;  %vm243_vm5 = vcmask 58368   ;;  %v955_v61 = vld [vmem:[%s1101_s3 + $0x8] sm:$0xff]  ;;  %v960_v62 = vld [vmem:[%s1102_s4] sm:$0xff] }
   0xf   :  { %v503_v60 = vsub.s32 4, %v906_v12  ;;  %v363_v3 = vand.u32 1, %v906_v12  ;;  %vm387_vm7 = vcmp.lt.s32.totalorder %v904_v11, 17  ;;  %vm418_vm8 = vcmp.lt.s32.totalorder %v904_v11, 16 }
  0x10   :  { %v296_v19 = vmul.f32 0.125, %v281_v9  ;;  %vm447_vm9 = vcmp.lt.s32.totalorder %v904_v11, 15  ;;  %vm476_vm10 = vcmp.lt.s32.totalorder %v904_v11, 1  ;;  %vm553_vm11 = vcmp.lt.s32.totalorder %v904_v11, 127 }
  0x11   :  { %vm972_vm6 = vcmp.eq.s32.totalorder %v363_v3, 0  ;;  %vm582_vm12 = vcmp.lt.s32.totalorder %v904_v11, 113  ;;  %vm611_vm13 = vcmp.lt.s32.totalorder %v904_v11, 112  ;;  %vm640_vm14 = vcmp.lt.s32.totalorder %v904_v11, 111 }
  0x91   :  { %v26_v13 = vpop.xlane.xlu0 %25  ;;  %v35_v18 = vpop.xlane.xlu1 %34 }
  0x92   :  { %v31_v17 = vmul.f32 0.00390625, %v26_v13  ;;  %v58_v22 = vrot.slane %v35_v18, %v45_v16  ;;  %v293_v13 = vadd.f32 %v292_v63, %v291_v55  ;;  %v295_v18 = vmul.f32 0.125, %v275_v8  ;;  %v965_v63 = vld [vmem:[%s1102_s4 + $0x8] sm:$0xff] }
  0x93   :  { %v512_v8 = vrot.slane %v960_v62, %v503_v60  ;;  %v516_v9 = vrot.slane %v965_v63, %v503_v60 }
  0x94   :  { %v46_v21 = vrot.slane %v31_v17, %v45_v16  ;;  %v322_v17 = vmax.f32 %v320_v59, %v321_v7  ;;  %v949_v59 = vld [vmem:[%s1101_s3] sm:$0xff]  ;;  %v508_v7 = vrot.slane %v955_v61, %v503_v60 }
  0x95   :  { %v29_v20 = vpop.xlane.xlu0 %28  ;;  %v38_v24 = vpop.xlane.xlu1 %37 }
  0x96   :  { %v32_v23 = vmul.f32 0.00390625, %v29_v20  ;;  %v62_v25 = vrot.slane %v38_v24, %v45_v16  ;;  %v66_v28 = vsel %vm65_vm1, %v46_v21, %v58_v22  ;;  %v297_v20 = vmul.f32 0.125, %v287_v10 }
  0x97   :  { %v298_v21 = vmul.f32 0.125, %v293_v13  ;;  %v323_v22 = vsel %vm65_vm1, %v295_v18, %v304_v14 }
  0x98   :  { %v50_v26 = vrot.slane %v32_v23, %v45_v16  ;;  %v316_v16 = vmax.f32 %v314_v58, %v315_v6  ;;  %v324_v23 = vsel %vm65_vm1, %v296_v19, %v310_v15  ;;  %v504_v6 = vrot.slane %v949_v59, %v503_v60 }
  0x99   :  { %v394_v15 = vsub.s32 0, %v906_v12 }
  0x9a   :  { %v67_v29 = vsel %vm65_vm1, %v50_v26, %v62_v25  ;;  %v325_v24 = vsel %vm65_vm1, %v297_v20, %v316_v16  ;;  %v326_v25 = vsel %vm65_vm1, %v298_v21, %v322_v17  ;;  %v331_v26 = vcombine.low %v323_v22, %v324_v23 }
  0x9b   :  { %v71_v30 = vcombine.low %v66_v28, %v67_v29  ;;  %v339_v28 = vcombine.low %v325_v24, %v326_v25  ;;  %v517_v16 = vsel %vm972_vm6, %v504_v6, %v512_v8  ;;  %v518_v17 = vsel %vm972_vm6, %v508_v7, %v516_v9 }
  0x9c   :  { %v933_v29 = vrot.slane %v331_v26, %v911_v27  ;;  %v423_v22 = vsub.s32 1, %v906_v12  ;;  %v452_v23 = vsub.s32 2, %v906_v12  ;;  %v521_v24 = vcombine.low %v517_v16, %v518_v17 }
  0x9d   :  { %v78_v31 = vrot.slane %v71_v30, %v911_v27  ;;  %v936_v30 = vrot.slane %v339_v28, %v911_v27  ;;  %v395_v25 = vrot.slane %v949_v59, %v394_v15  ;;  %v403_v26 = vrot.slane %v960_v62, %v394_v15 }
  0x9e   :  { %v399_v28 = vrot.slane %v955_v61, %v394_v15  ;;  %v432_v33 = vrot.slane %v960_v62, %v423_v22 }
  0x9f   :  { %790 = vmatmul.mubr.msk.f32.vlgmr.msra.gmra.mrb[0].mxu0 %vm79_vm2, %v78_v31  ;;  %v372_v31 = vcombine.low %v933_v29, %v936_v30 }
  0xa1   :  { %v379_v32 = vrot.slane %v372_v31, %v911_v27  ;;  %v407_v31 = vrot.slane %v965_v63, %v394_v15 }
  0xa3   :  { %414 = vrot.lane.b32.xlu1 %v379_v32, %s835_s28  ;;  %v380_v34 = vcombine.high %v379_v32, %v379_v32  ;;  %383 = vrot.lane.b32.xlu0 %v379_v32, %s836_s29 }
  0xa7   :  { %385 = vrot.lane.b32.xlu1 %v380_v34, %s836_s29  ;;  %443 = vrot.lane.b32.xlu0 %v379_v32, %s837_s30 }
  0xab   :  { %416 = vrot.lane.b32.xlu1 %v380_v34, %s835_s28  ;;  %472 = vrot.lane.b32.xlu0 %v379_v32, %s838_s6 }
  0xaf   :  { %445 = vrot.lane.b32.xlu1 %v380_v34, %s837_s30  ;;  %549 = vrot.lane.b32.xlu0 %v379_v32, %s839_s7 }
  0xb3   :  { %474 = vrot.lane.b32.xlu1 %v380_v34, %s838_s6  ;;  %578 = vrot.lane.b32.xlu0 %v379_v32, %s840_s8 }
  0xb7   :  { %551 = vrot.lane.b32.xlu1 %v380_v34, %s839_s7  ;;  %607 = vrot.lane.b32.xlu0 %v379_v32, %s841_s2 }
  0xbb   :  { %580 = vrot.lane.b32.xlu1 %v380_v34, %s840_s8  ;;  %636 = vrot.lane.b32.xlu0 %v379_v32, %s842_s9  ;;  %v424_v32 = vrot.slane %v949_v59, %v423_v22 }
  0xbf   :  { %609 = vrot.lane.b32.xlu1 %v380_v34, %s841_s2 }
  0xc3   :  { %638 = vrot.lane.b32.xlu1 %v380_v34, %s842_s9  ;;  %v428_v34 = vrot.slane %v955_v61, %v423_v22 }
 0x115   :  { %v415_v58 = vpop.permute.xlu1 %414  ;;  %v384_v20 = vpop.permute.xlu0 %383 }
 0x119   :  { %v386_v4 = vpop.permute.xlu1 %385 }
 0x11d   :  { %v417_v19 = vpop.permute.xlu1 %416 }
 0x172   :  { %v148_v35 = vpop.f32.mrb[0].mxu0 }
 0x173   :  { %v152_v36 = vmax.f32 %v148_v35, 0.0  ;;  %v791_v37 = vpop.f32.mrb[1].mxu0  ;;  %v436_v35 = vrot.slane %v965_v63, %v423_v22 }
 0x174   :  { %v453_v37 = vrot.slane %v949_v59, %v452_v23 }
 0x175   :  { %795 = vmatmul.mubr.msk.f32.vlgmr.msra.gmra.mrb[0].mxu1 %vm154_vm4, %v152_v36  ;;  %v446_v36 = vpop.permute.xlu1 %445 }
 0x179   :  { %v475_v3 = vpop.permute.xlu1 %474 }
 0x248   :  { %v228_v38 = vpop.f32.mrb[0].mxu1 }
 0x249   :  { %v239_v39 = vrot.slane %v228_v38, %v911_v27  ;;  %v796_v40 = vpop.f32.mrb[1].mxu1  ;;  %v444_v38 = vpop.permute.xlu0 %443 }
 0x24a   :  { %v408_v40 = vsel %vm972_vm6, %v395_v25, %v403_v26  ;;  %v449_v15 = vsel %vm447_vm9, %v446_v36, %v444_v38 }
 0x24b   :  { %v240_v41 = vcombine.high %v239_v39, %v239_v39  ;;  %v244_v42 = vsel %vm243_vm5, %v239_v39, 0.0  ;;  %v528_v39 = vrot.slane %v521_v24, %v911_v27 }
 0x24c   :  { %v245_v43 = vrot.slane %v244_v42, 4 }
 0x24d   :  { %v251_v44 = vsel %vm243_vm5, %v240_v41, 0.0  ;;  %v388_v41 = vsel %vm387_vm7, %v384_v20, %v386_v4  ;;  %v473_v6 = vpop.permute.xlu0 %472  ;;  %v532_v16 = vmul.f32 %v528_v39, %v933_v29 }
 0x24e   :  { %v246_v45 = vadd.f32 %v245_v43, %v244_v42  ;;  %v252_v46 = vrot.slane %v251_v44, 4  ;;  %v389_v42 = vsel %vm387_vm7, %v386_v4, %v384_v20  ;;  %v457_v43 = vrot.slane %v955_v61, %v452_v23 }
 0x24f   :  { %v477_v25 = vsel %vm476_vm10, %v473_v6, %v475_v3  ;;  %v478_v26 = vsel %vm476_vm10, %v475_v3, %v473_v6 }
 0x250   :  { %v247_v47 = vrot.slane %v246_v45, 2  ;;  %v253_v48 = vadd.f32 %v252_v46, %v251_v44  ;;  %v409_v44 = vsel %vm972_vm6, %v399_v28, %v407_v31  ;;  %v465_v46 = vrot.slane %v965_v63, %v452_v23  ;;  %v552_v28 = vpop.permute.xlu1 %551 }
 0x251   :  { %v550_v31 = vpop.permute.xlu0 %549 }
 0x252   :  { %v248_v49 = vadd.f32 %v247_v47, %v246_v45  ;;  %v254_v50 = vrot.slane %v253_v48, 2  ;;  %v461_v45 = vrot.slane %v960_v62, %v452_v23  ;;  %v481_v47 = vsub.s32 3, %v906_v12 }
 0x253   :  { %v467_v60 = vsel %vm972_vm6, %v457_v43, %v465_v46 }
 0x254   :  { %v249_v51 = vrot.slane %v248_v49, 1  ;;  %v255_v52 = vadd.f32 %v254_v50, %v253_v48  ;;  %v437_v48 = vsel %vm972_vm6, %v424_v32, %v432_v33  ;;  %v438_v50 = vsel %vm972_vm6, %v428_v34, %v436_v35  ;;  %v581_v43 = vpop.permute.xlu1 %580 }
 0x255   :  { %v482_v4 = vrot.slane %v949_v59, %v481_v47  ;;  %v486_v8 = vrot.slane %v955_v61, %v481_v47  ;;  %v490_v9 = vrot.slane %v960_v62, %v481_v47  ;;  %v587_v35 = vsub.s32 6, %v906_v12  ;;  %v579_v46 = vpop.permute.xlu0 %578 }
 0x256   :  { %v250_v53 = vadd.f32 %v249_v51, %v248_v49  ;;  %v256_v54 = vrot.slane %v255_v52, 1  ;;  %v420_v49 = vsel %vm418_vm8, %v417_v19, %v415_v58  ;;  %v419_v51 = vsel %vm418_vm8, %v415_v58, %v417_v19 }
 0x257   :  { %v440_v58 = vmul.f32 %v438_v50, %v419_v51  ;;  %v495_v23 = vsel %vm972_vm6, %v482_v4, %v490_v9  ;;  %v600_v50 = vrot.slane %v965_v63, %v587_v35  ;;  %v583_v9 = vsel %vm582_vm12, %v579_v46, %v581_v43 }
 0x258   :  { %v257_v55 = vadd.f32 %v256_v54, %v255_v52  ;;  %v773_v56 = vmul.f32 -1.442695, %v250_v53  ;;  %v529_v52 = vcombine.high %v528_v39, %v528_v39  ;;  %v410_v54 = vmul.f32 %v408_v40, %v389_v42  ;;  %v610_v6 = vpop.permute.xlu1 %609 }
 0x25a   :  { %808 = vpow2.f32 %v773_v56  ;;  %v774_v57 = vmul.f32 -1.442695, %v257_v55  ;;  %v411_v55 = vmul.f32 %v409_v44, %v388_v41  ;;  %v439_v56 = vmul.f32 %v437_v48, %v420_v49 }
 0x25b   :  { %v533_v17 = vmul.f32 %v529_v52, %v936_v30  ;;  %v588_v44 = vrot.slane %v949_v59, %v587_v35  ;;  %v596_v49 = vrot.slane %v960_v62, %v587_v35  ;;  %v554_v52 = vsel %vm553_vm11, %v550_v31, %v552_v28 }
 0x25c   :  { %810 = vpow2.f32 %v774_v57  ;;  %v466_v57 = vsel %vm972_vm6, %v453_v37, %v461_v45  ;;  %v441_v19 = vadd.f32 %v439_v56, %v410_v54  ;;  %v442_v20 = vadd.f32 %v440_v58, %v411_v55 }
 0x25d   :  { %v536_v29 = vcombine.low %v532_v16, %v533_v17  ;;  %v592_v45 = vrot.slane %v955_v61, %v587_v35  ;;  %v616_v54 = vsub.s32 7, %v906_v12 }
 0x25f   :  { %v543_v40 = vrot.slane %v536_v29, %v911_v27  ;;  %v621_v58 = vrot.slane %v955_v61, %v616_v54 }
 0x261   :  { %v544_v51 = vcombine.high %v543_v40, %v543_v40 }
 0x264   :  { %v809_v13 = vpop.eup %808 }
 0x265   :  { %v264_v14 = vadd.f32 1.0, %v809_v13  ;;  %v494_v13 = vrot.slane %v965_v63, %v481_v47 }
 0x266   :  { %v811_v18 = vpop.eup %810 }
 0x267   :  { %812 = vrcp.f32 %v264_v14  ;;  %v265_v21 = vadd.f32 1.0, %v811_v18  ;;  %v448_v14 = vsel %vm447_vm9, %v444_v38, %v446_v36  ;;  %v558_v18 = vsub.s32 5, %v906_v12 }
 0x268   :  { %v469_v22 = vmul.f32 %v467_v60, %v448_v14  ;;  %v496_v24 = vsel %vm972_vm6, %v486_v8, %v494_v13  ;;  %v497_v38 = vmul.f32 %v495_v23, %v478_v26  ;;  %v602_v60 = vsel %vm972_vm6, %v592_v45, %v600_v50  ;;  %v608_v8 = vpop.permute.xlu0 %607  ;;  %v778_v23 = vld [vmem:[%s1102_s4 + $0x18] ss:$0 sm:$0xff] }
 0x269   :  { %814 = vrcp.f32 %v265_v21  ;;  %v468_v21 = vmul.f32 %v466_v57, %v449_v15  ;;  %v559_v30 = vrot.slane %v949_v59, %v558_v18  ;;  %v563_v32 = vrot.slane %v955_v61, %v558_v18 }
 0x26a   :  { %v567_v33 = vrot.slane %v960_v62, %v558_v18  ;;  %v571_v34 = vrot.slane %v965_v63, %v558_v18  ;;  %v471_v37 = vadd.f32 %v469_v22, %v442_v20  ;;  %v498_v39 = vmul.f32 %v496_v24, %v477_v25  ;;  %v777_v22 = vld [vmem:[%s1102_s4 + $0x10] ss:$0 sm:$0xff] }
 0x26b   :  { %v470_v36 = vadd.f32 %v468_v21, %v441_v19  ;;  %v601_v57 = vsel %vm972_vm6, %v588_v44, %v596_v49  ;;  %v584_v12 = vsel %vm582_vm12, %v581_v43, %v579_v46  ;;  %v625_v13 = vrot.slane %v960_v62, %v616_v54  ;;  %v775_v62 = vld [vmem:[%s1101_s3 + $0x10] ss:$0 sm:$0xff]  ;;  %v639_v21 = vpop.permute.xlu1 %638 }
 0x26c   :  { %v572_v41 = vsel %vm972_vm6, %v559_v30, %v567_v33  ;;  %v573_v42 = vsel %vm972_vm6, %v563_v32, %v571_v34  ;;  %v500_v48 = vadd.f32 %v498_v39, %v471_v37  ;;  %v629_v14 = vrot.slane %v965_v63, %v616_v54  ;;  %v776_v63 = vld [vmem:[%s1101_s3 + $0x18] ss:$0 sm:$0xff]  ;;  %v637_v24 = vpop.permute.xlu0 %636 }
 0x26d   :  { %v499_v47 = vadd.f32 %v497_v38, %v470_v36  ;;  %v574_v55 = vmul.f32 %v572_v41, %v554_v52  ;;  %v603_v17 = vmul.f32 %v601_v57, %v583_v9  ;;  %v604_v18 = vmul.f32 %v602_v60, %v584_v12 }
 0x26e   :  { %v548_v4 = vadd.f32 %v544_v51, %v500_v48  ;;  %v612_v61 = vsel %vm611_vm13, %v608_v8, %v610_v6  ;;  %v613_v20 = vsel %vm611_vm13, %v610_v6, %v608_v8  ;;  %v660_v30 = vsel %vm972_vm6, %v776_v63, %v778_v23 }
 0x26f   :  { %v547_v3 = vadd.f32 %v543_v40, %v499_v47  ;;  %v641_v32 = vsel %vm640_vm14, %v637_v24, %v639_v21  ;;  %v642_v33 = vsel %vm640_vm14, %v639_v21, %v637_v24 }
 0x270   :  { %v662_v37 = vmul.f32 %v660_v30, %v642_v33 }
 0x271   :  { %v813_v53 = vpop.eup %812  ;;  %v576_v15 = vadd.f32 %v574_v55, %v547_v3 }
 0x272   :  { %749 = vbcast.lane.b32.xlu0 %v813_v53, 256  ;;  %v555_v53 = vsel %vm553_vm11, %v552_v28, %v550_v31  ;;  %v659_v31 = vsel %vm972_vm6, %v775_v62, %v777_v22 }
 0x273   :  { %v815_v7 = vpop.eup %814  ;;  %v575_v56 = vmul.f32 %v573_v42, %v555_v53  ;;  %v605_v25 = vadd.f32 %v603_v17, %v576_v15  ;;  %v661_v36 = vmul.f32 %v659_v31, %v641_v32 }
 0x274   :  { %752 = vbcast.lane.b32.xlu1 %v815_v7, 256  ;;  %v617_v7 = vrot.slane %v949_v59, %v616_v54  ;;  %v631_v59 = vsel %vm972_vm6, %v621_v58, %v629_v14 }
 0x275   :  { %v577_v16 = vadd.f32 %v575_v56, %v548_v4  ;;  %v633_v29 = vmul.f32 %v631_v59, %v613_v20 }
 0x276   :  { %v630_v19 = vsel %vm972_vm6, %v617_v7, %v625_v13 }
 0x277   :  { %v606_v26 = vadd.f32 %v604_v18, %v577_v16  ;;  %v632_v28 = vmul.f32 %v630_v19, %v612_v61 }
 0x279   :  { %v634_v34 = vadd.f32 %v632_v28, %v605_v25  ;;  %v635_v35 = vadd.f32 %v633_v29, %v606_v26 }
 0x27b   :  { %v663_v38 = vadd.f32 %v661_v36, %v634_v34  ;;  %v664_v39 = vadd.f32 %v662_v37, %v635_v35 }
 0x27d   :  { %v667_v11 = vcombine.low %v663_v38, %v664_v39 }
 0x27f   :  { %v674_v40 = vrot.slane %v667_v11, %v911_v27 }
 0x281   :  { %v675_v41 = vcombine.high %v674_v40, %v674_v40  ;;  %v682_v42 = vrot.slane %v674_v40, %v911_v27 }
 0x283   :  { %v690_v43 = vrot.slane %v675_v41, %v911_v27  ;;  %v683_v44 = vcombine.high %v682_v42, %v682_v42  ;;  %v696_v10 = vsel %vm158_vm3, %v682_v42, 0.0 }
 0x284   :  { %v697_v48 = vrot.slane %v696_v10, 4 }
 0x285   :  { %v691_v45 = vcombine.high %v690_v43, %v690_v43  ;;  %v703_v46 = vsel %vm158_vm3, %v683_v44, 0.0  ;;  %v710_v47 = vsel %vm158_vm3, %v690_v43, 0.0 }
 0x286   :  { %v704_v50 = vrot.slane %v703_v46, 4  ;;  %v711_v51 = vrot.slane %v710_v47, 4  ;;  %v698_v53 = vadd.f32 %v697_v48, %v696_v10 }
 0x287   :  { %v717_v49 = vsel %vm158_vm3, %v691_v45, 0.0 }
 0x288   :  { %v718_v52 = vrot.slane %v717_v49, 4  ;;  %v705_v54 = vadd.f32 %v704_v50, %v703_v46  ;;  %v712_v55 = vadd.f32 %v711_v51, %v710_v47  ;;  %v699_v57 = vrot.slane %v698_v53, 2 }
 0x28a   :  { %v719_v56 = vadd.f32 %v718_v52, %v717_v49  ;;  %v706_v27 = vrot.slane %v705_v54, 2  ;;  %v713_v60 = vrot.slane %v712_v55, 2  ;;  %v700_v4 = vadd.f32 %v699_v57, %v698_v53 }
 0x28c   :  { %v720_v3 = vrot.slane %v719_v56, 2  ;;  %v707_v6 = vadd.f32 %v706_v27, %v705_v54  ;;  %v714_v7 = vadd.f32 %v713_v60, %v712_v55  ;;  %v701_v8 = vrot.slane %v700_v4, 1 }
 0x28e   :  { %v721_v58 = vadd.f32 %v720_v3, %v719_v56  ;;  %v708_v9 = vrot.slane %v707_v6, 1  ;;  %v715_v12 = vrot.slane %v714_v7, 1  ;;  %v702_v14 = vadd.f32 %v701_v8, %v700_v4 }
 0x290   :  { %v722_v13 = vrot.slane %v721_v58, 1  ;;  %v709_v15 = vadd.f32 %v708_v9, %v707_v6  ;;  %v716_v16 = vadd.f32 %v715_v12, %v714_v7  ;;  %v779_v18 = vmul.f32 -1.442695, %v702_v14 }
 0x292   :  { %v723_v17 = vadd.f32 %v722_v13, %v721_v58  ;;  %v780_v19 = vmul.f32 -1.442695, %v709_v15  ;;  %v781_v59 = vmul.f32 -1.442695, %v716_v16  ;;  %816 = vpow2.f32 %v779_v18 }
 0x294   :  { %v782_v61 = vmul.f32 -1.442695, %v723_v17  ;;  %818 = vpow2.f32 %v780_v19 }
 0x295   :  { %820 = vpow2.f32 %v781_v59 }
 0x296   :  { %822 = vpow2.f32 %v782_v61 }
 0x29c   :  { %v817_v20 = vpop.eup %816 }
 0x29d   :  { %v736_v22 = vadd.f32 1.0, %v817_v20 }
 0x29e   :  { %v819_v62 = vpop.eup %818 }
 0x29f   :  { %v821_v63 = vpop.eup %820  ;;  %v737_v23 = vadd.f32 1.0, %v819_v62  ;;  %824 = vrcp.f32 %v736_v22 }
 0x2a0   :  { %v823_v21 = vpop.eup %822  ;;  %v738_v24 = vadd.f32 1.0, %v821_v63 }
 0x2a1   :  { %v739_v25 = vadd.f32 1.0, %v823_v21  ;;  %826 = vrcp.f32 %v737_v23 }
 0x2a2   :  { %828 = vrcp.f32 %v738_v24 }
 0x2a3   :  { %830 = vrcp.f32 %v739_v25 }
 0x2a9   :  { %v825_v26 = vpop.eup %824 }
 0x2ab   :  { %v827_v28 = vpop.eup %826 }
 0x2ac   :  { %v829_v31 = vpop.eup %828 }
 0x2ad   :  { %v831_v33 = vpop.eup %830 }
 0x2e4   :  { %v750_v29 = vpop.permute.xlu0 %749 }
 0x2e5   :  { %v754_v30 = vadd.f32 %v825_v26, %v750_v29  ;;  %v755_v32 = vadd.f32 %v827_v28, %v750_v29 }
 0x2e6   :  { %v753_v34 = vpop.permute.xlu1 %752 }
 0x2e7   :  { %v758_v35 = vmul.f32 %v754_v30, %v876_v0  ;;  %v759_v36 = vmul.f32 %v755_v32, %v881_v1  ;;  %v756_v37 = vadd.f32 %v829_v31, %v753_v34  ;;  %v757_v38 = vadd.f32 %v831_v33, %v753_v34 }
 0x2e9   :  { %762 = vst [vmem:[%s1103_s5] sm:$0xff] %v758_v35  ;;  %763 = vst [vmem:[%s1103_s5 + $0x8] sm:$0xff] %v759_v36  ;;  %v760_v39 = vmul.f32 %v756_v37, %v886_v2  ;;  %v761_v11 = vmul.f32 %v757_v38, %v895_v5 }
 0x2eb   :  { %764 = vst [vmem:[%s1103_s5 + $0x10] sm:$0xff] %v760_v39  ;;  %765 = vst [vmem:[%s1103_s5 + $0x18] sm:$0xff] %v761_v11 }

</bundles_post_ra>
